<compile_context>
chip_gen: v7x
topology: tpu7x:2x2x1
jax: 0.10.0
libtpu: 0.0.40
codegen_flags: <defaults>
</compile_context>

<pallas_src>
import jax
import jax.numpy as jnp
from jax.experimental import pallas as pl
from jax.experimental.pallas import tpu as pltpu


def _netvlad_kernel(x_ref, w_ref, cent_ref, out_ref, acc_ref, asum_ref):
    # x_ref:    (1, C, TP) input tile, channels-first (sublanes=C, lanes=TP)
    # w_ref:    (K, C)     conv 1x1 weight
    # cent_ref: (K, C)     cluster centroids
    # out_ref:  (1, K, C)  vlad output for this batch element
    # acc_ref:  VMEM (K, C) f32, accumulates sum_p a[p,k] * xn[p,c]
    # asum_ref: VMEM (K, 1) f32, accumulates sum_p a[p,k]
    p = pl.program_id(1)

    @pl.when(p == 0)
    def _init():
        acc_ref[...] = jnp.zeros_like(acc_ref)
        asum_ref[...] = jnp.zeros_like(asum_ref)

    x = x_ref[0]  # (C, TP) f32

    # Descriptor-wise L2 normalization over channels (torch F.normalize p=2 dim=1):
    # x / max(||x||, 1e-12) == x * rsqrt(max(||x||^2, 1e-24))   (rsqrt -> EUP slot)
    sq = jnp.sum(x * x, axis=0, keepdims=True)                 # (1, TP)
    xn = x * jax.lax.rsqrt(jnp.maximum(sq, 1e-24))             # (C, TP)

    # Soft assignment: 1x1 conv == (K, C) @ (C, TP); softmax over clusters (axis 0).
    logits = jax.lax.dot_general(
        w_ref[...], xn,
        dimension_numbers=(((1,), (0,)), ((), ())),
        preferred_element_type=jnp.float32)                    # (K, TP)
    m = jnp.max(logits, axis=0, keepdims=True)                 # (1, TP)
    e = jnp.exp(logits - m)                                    # (K, TP)
    denom = jnp.sum(e, axis=0, keepdims=True)                  # (1, TP)
    a = e * pl.reciprocal(denom, approx=False)                 # (K, TP)

    # Contract the spatial axis directly on the MXU (no explicit transpose of a).
    acc_ref[...] += jax.lax.dot_general(
        a, xn,
        dimension_numbers=(((1,), (1,)), ((), ())),
        preferred_element_type=jnp.float32)                    # (K, C)
    asum_ref[...] += jnp.sum(a, axis=1, keepdims=True)         # (K, 1)

    @pl.when(p == pl.num_programs(1) - 1)
    def _finalize():
        out_ref[0] = acc_ref[...] - cent_ref[...] * asum_ref[...]


def _pick_tile_p(P, max_tile=512):
    """Largest spatial tile <= max_tile that is a multiple of 128 (lane width)
    and divides P; falls back to a full-extent block when P isn't lane-aligned."""
    if P % 128 != 0:
        return P
    tp = max((min(P, max_tile) // 128) * 128, 128)
    while P % tp:
        tp -= 128
    return tp


def netvlad_forward(x_nchw, conv_weight, centroids, normalize_input=True,
                    max_tile_p=512):
    """NetVLAD forward.

    Args:
      x_nchw:      (N, C, H, W) float32 input (PyTorch NCHW convention).
      conv_weight: (K, C, 1, 1) float32 conv1x1 weight (no bias).
      centroids:   (K, C) float32 cluster centroids.
    Returns:
      vlad: (N, K, C) float32
    """
    N, C, H, W = x_nchw.shape
    K = conv_weight.shape[0]
    P = H * W
    TP = _pick_tile_p(P, max_tile_p)
    n_ptiles = P // TP

    # normalize_input=True is baked into the kernel; the module default is True.
    assert normalize_input, "kernel implements normalize_input=True (module default)"

    # Pure reshapes, no data movement: NCHW -> (N, C, P); (K, C, 1, 1) -> (K, C).
    x_ncp = x_nchw.reshape(N, C, P).astype(jnp.float32)
    w_kc = conv_weight.reshape(K, C).astype(jnp.float32)
    cent = centroids.astype(jnp.float32)

    out = pl.pallas_call(
        _netvlad_kernel,
        out_shape=jax.ShapeDtypeStruct((N, K, C), jnp.float32),
        grid_spec=pltpu.PrefetchScalarGridSpec(
            num_scalar_prefetch=0,
            grid=(N, n_ptiles),                                   # reduction axis last
            in_specs=[
                pl.BlockSpec((1, C, TP), lambda n, p: (n, 0, p)),  # x spatial tile
                pl.BlockSpec((K, C), lambda n, p: (0, 0)),         # conv weight (resident)
                pl.BlockSpec((K, C), lambda n, p: (0, 0)),         # centroids (resident)
            ],
            out_specs=pl.BlockSpec((1, K, C), lambda n, p: (n, 0, 0)),
            scratch_shapes=[
                pltpu.VMEM((K, C), jnp.float32),                   # weighted-sum acc
                pltpu.VMEM((K, 1), jnp.float32),                   # assignment mass acc
            ],
        ),
        compiler_params=pltpu.CompilerParams(
            # TODO(synk): for N=1 inference on v7x, additionally split P across the
            # two TensorCores and combine the two (K, C) partials to use both cores.
            dimension_semantics=("parallel", "arbitrary"),
        ),
    )(x_ncp, w_kc, cent)
    return out


def netvlad_reference(x_nchw, conv_weight, centroids):
    """Pure-JAX reference mirroring the PyTorch forward exactly."""
    N, C, H, W = x_nchw.shape
    K = conv_weight.shape[0]
    P = H * W
    x = x_nchw.astype(jnp.float32)
    # F.normalize over channel dim
    norm = jnp.sqrt(jnp.sum(x * x, axis=1, keepdims=True))
    x = x / jnp.maximum(norm, 1e-12)
    # 1x1 conv -> (N, K, P), softmax over clusters
    w = conv_weight.reshape(K, C).astype(jnp.float32)
    soft = jnp.einsum("kc,ncp->nkp", w, x.reshape(N, C, P),
                      precision=jax.lax.Precision.HIGHEST)
    soft = jax.nn.softmax(soft, axis=1)
    x_flat = x.reshape(N, C, P)
    residual = x_flat[:, None, :, :] - centroids.astype(jnp.float32)[None, :, :, None]
    residual = residual * soft[:, :, None, :]
    return residual.sum(axis=-1)  # (N, K, C)


if __name__ == "__main__":
    # Small, module-consistent shapes: batch=2, dim=128, 16x16 spatial, 32 clusters.
    # max_tile_p=128 forces two P tiles so the accumulation path is exercised.
    N, C, H, W, K = 2, 128, 16, 16, 32

    key = jax.random.PRNGKey(0)
    k1, k2, k3 = jax.random.split(key, 3)
    x = jax.random.normal(k1, (N, C, H, W), dtype=jnp.float32)
    conv_weight = jax.random.normal(k2, (K, C, 1, 1), dtype=jnp.float32) * 0.1
    centroids = jax.random.uniform(k3, (K, C), dtype=jnp.float32)  # torch.rand analogue

    vlad = netvlad_forward(x, conv_weight, centroids, max_tile_p=128)
    vlad = jax.block_until_ready(vlad)

    ref = netvlad_reference(x, conv_weight, centroids)
    assert vlad.shape == (N, K, C), vlad.shape
    max_err = float(jnp.max(jnp.abs(vlad - ref)))
    assert jnp.allclose(vlad, ref, atol=1e-3, rtol=1e-3), max_err

    print("KERNEL_OK")
</pallas_src>

<mosaic_0001>
module attributes {stable_mosaic.version = 11 : i64} {
  func.func @_netvlad_kernel(%arg0: i32, %arg1: i32, %arg2: memref<1x128x128xf32, #tpu.memory_space<vmem>>, %arg3: memref<32x128xf32, #tpu.memory_space<vmem>>, %arg4: memref<32x128xf32, #tpu.memory_space<vmem>>, %arg5: memref<1x32x128xf32, #tpu.memory_space<vmem>>, %arg6: memref<32x128xf32, #tpu.memory_space<vmem>>, %arg7: memref<32x1xf32, #tpu.memory_space<vmem>>) attributes {dimension_semantics = [#tpu.dimension_semantics<parallel>, #tpu.dimension_semantics<arbitrary>], iteration_bounds = array<i64: 2, 2>, scalar_prefetch = 0 : i64, scratch_operands = 2 : i64, tpu.core_type = #tpu.core_type<tc>, window_params = [{transform_indices = @transform_0, window_bounds = array<i64: 1, 128, 128>}, {pipeline_mode = #tpu.pipeline_mode<synchronous>, transform_indices = @transform_1, window_bounds = array<i64: 32, 128>}, {pipeline_mode = #tpu.pipeline_mode<synchronous>, transform_indices = @transform_2, window_bounds = array<i64: 32, 128>}, {transform_indices = @transform_3, window_bounds = array<i64: 1, 32, 128>}]} {
    %c0_i32 = arith.constant 0 : i32
    %0 = arith.cmpi eq, %arg1, %c0_i32 : i32
    %1 = arith.extui %0 : i1 to i32
    %c0_i32_0 = arith.constant 0 : i32
    %2 = arith.cmpi ne, %1, %c0_i32_0 : i32
    scf.if %2 {
      %cst_20 = arith.constant 0.000000e+00 : f32
      %37 = vector.broadcast %cst_20 : f32 to vector<32x128xf32>
      %c0_21 = arith.constant 0 : index
      %c0_22 = arith.constant 0 : index
      %38 = vector.load %arg6[%c0_21, %c0_22] : memref<32x128xf32, #tpu.memory_space<vmem>>, vector<32x128xf32>
      tpu.vector_store %arg6[%c0_21, %c0_22], %37 {strides = array<i32>} : memref<32x128xf32, #tpu.memory_space<vmem>>, vector<32x128xf32>,
      %cst_23 = arith.constant 0.000000e+00 : f32
      %39 = vector.broadcast %cst_23 : f32 to vector<32x1xf32>
      %c0_24 = arith.constant 0 : index
      %c0_25 = arith.constant 0 : index
      %40 = vector.load %arg7[%c0_24, %c0_25] : memref<32x1xf32, #tpu.memory_space<vmem>>, vector<32x1xf32>
      tpu.vector_store %arg7[%c0_24, %c0_25], %39 {strides = array<i32>} : memref<32x1xf32, #tpu.memory_space<vmem>>, vector<32x1xf32>,
    } else {
    }
    %c0 = arith.constant 0 : index
    %c0_1 = arith.constant 0 : index
    %c0_2 = arith.constant 0 : index
    %3 = vector.load %arg2[%c0, %c0_1, %c0_2] : memref<1x128x128xf32, #tpu.memory_space<vmem>>, vector<1x128x128xf32>
    %4 = vector.shape_cast %3 : vector<1x128x128xf32> to vector<128x128xf32>
    %5 = arith.mulf %4, %4 : vector<128x128xf32>
    %cst = arith.constant dense<0.000000e+00> : vector<128xf32>
    %6 = vector.multi_reduction <add>, %5, %cst [0] : vector<128x128xf32> to vector<128xf32>
    %7 = vector.shape_cast %6 : vector<128xf32> to vector<1x128xf32>
    %cst_3 = arith.constant 1.000000e-24 : f32
    %8 = vector.broadcast %cst_3 : f32 to vector<1x128xf32>
    %9 = arith.maximumf %7, %8 : vector<1x128xf32>
    %10 = math.rsqrt %9 : vector<1x128xf32>
    %11 = vector.broadcast %10 : vector<1x128xf32> to vector<128x128xf32>
    %12 = arith.mulf %4, %11 : vector<128x128xf32>
    %c0_4 = arith.constant 0 : index
    %c0_5 = arith.constant 0 : index
    %13 = vector.load %arg3[%c0_4, %c0_5] : memref<32x128xf32, #tpu.memory_space<vmem>>, vector<32x128xf32>
    %cst_6 = arith.constant dense<0.000000e+00> : vector<32x128xf32>
    %14 = tpu.matmul %13, %12, %cst_6 {dimension_numbers = #tpu.dot_dimension_numbers<[1], [0], [0], [1], [0, 0, 1, 1], [], []>} : vector<32x128xf32>, vector<128x128xf32>, vector<32x128xf32> -> vector<32x128xf32>
    %cst_7 = arith.constant dense<0xFF800000> : vector<128xf32>
    %15 = vector.multi_reduction <maximumf>, %14, %cst_7 [0] : vector<32x128xf32> to vector<128xf32>
    %16 = vector.shape_cast %15 : vector<128xf32> to vector<1x128xf32>
    %17 = vector.broadcast %16 : vector<1x128xf32> to vector<32x128xf32>
    %18 = arith.subf %14, %17 : vector<32x128xf32>
    %19 = math.exp %18 : vector<32x128xf32>
    %cst_8 = arith.constant dense<0.000000e+00> : vector<128xf32>
    %20 = vector.multi_reduction <add>, %19, %cst_8 [0] : vector<32x128xf32> to vector<128xf32>
    %21 = vector.shape_cast %20 : vector<128xf32> to vector<1x128xf32>
    %22 = tpu.reciprocal %21 : vector<1x128xf32> -> vector<1x128xf32>
    %23 = vector.broadcast %22 : vector<1x128xf32> to vector<32x128xf32>
    %24 = arith.mulf %19, %23 : vector<32x128xf32>
    %c0_9 = arith.constant 0 : index
    %c0_10 = arith.constant 0 : index
    %25 = vector.load %arg6[%c0_9, %c0_10] : memref<32x128xf32, #tpu.memory_space<vmem>>, vector<32x128xf32>
    %cst_11 = arith.constant dense<0.000000e+00> : vector<32x128xf32>
    %26 = tpu.matmul %24, %12, %cst_11 {dimension_numbers = #tpu.dot_dimension_numbers<[1], [1], [0], [0], [0, 0, 1, 0], [], []>} : vector<32x128xf32>, vector<128x128xf32>, vector<32x128xf32> -> vector<32x128xf32>
    %27 = arith.addf %25, %26 : vector<32x128xf32>
    %c0_12 = arith.constant 0 : index
    %c0_13 = arith.constant 0 : index
    %28 = vector.load %arg6[%c0_12, %c0_13] : memref<32x128xf32, #tpu.memory_space<vmem>>, vector<32x128xf32>
    tpu.vector_store %arg6[%c0_12, %c0_13], %27 {strides = array<i32>} : memref<32x128xf32, #tpu.memory_space<vmem>>, vector<32x128xf32>,
    %c0_14 = arith.constant 0 : index
    %c0_15 = arith.constant 0 : index
    %29 = vector.load %arg7[%c0_14, %c0_15] : memref<32x1xf32, #tpu.memory_space<vmem>>, vector<32x1xf32>
    %cst_16 = arith.constant dense<0.000000e+00> : vector<32xf32>
    %30 = vector.multi_reduction <add>, %24, %cst_16 [1] : vector<32x128xf32> to vector<32xf32>
    %31 = vector.shape_cast %30 : vector<32xf32> to vector<32x1xf32>
    %32 = arith.addf %29, %31 : vector<32x1xf32>
    %c0_17 = arith.constant 0 : index
    %c0_18 = arith.constant 0 : index
    %33 = vector.load %arg7[%c0_17, %c0_18] : memref<32x1xf32, #tpu.memory_space<vmem>>, vector<32x1xf32>
    tpu.vector_store %arg7[%c0_17, %c0_18], %32 {strides = array<i32>} : memref<32x1xf32, #tpu.memory_space<vmem>>, vector<32x1xf32>,
    %c1_i32 = arith.constant 1 : i32
    %34 = arith.cmpi eq, %arg1, %c1_i32 : i32
    %35 = arith.extui %34 : i1 to i32
    %c0_i32_19 = arith.constant 0 : i32
    %36 = arith.cmpi ne, %35, %c0_i32_19 : i32
    scf.if %36 {
      %c0_20 = arith.constant 0 : index
      %c0_21 = arith.constant 0 : index
      %37 = vector.load %arg6[%c0_20, %c0_21] : memref<32x128xf32, #tpu.memory_space<vmem>>, vector<32x128xf32>
      %c0_22 = arith.constant 0 : index
      %c0_23 = arith.constant 0 : index
      %38 = vector.load %arg4[%c0_22, %c0_23] : memref<32x128xf32, #tpu.memory_space<vmem>>, vector<32x128xf32>
      %c0_24 = arith.constant 0 : index
      %c0_25 = arith.constant 0 : index
      %39 = vector.load %arg7[%c0_24, %c0_25] : memref<32x1xf32, #tpu.memory_space<vmem>>, vector<32x1xf32>
      %40 = vector.broadcast %39 : vector<32x1xf32> to vector<32x128xf32>
      %41 = arith.mulf %38, %40 : vector<32x128xf32>
      %42 = arith.subf %37, %41 : vector<32x128xf32>
      %c0_26 = arith.constant 0 : index
      %c0_27 = arith.constant 0 : index
      %c0_28 = arith.constant 0 : index
      %43 = vector.load %arg5[%c0_26, %c0_27, %c0_28] : memref<1x32x128xf32, #tpu.memory_space<vmem>>, vector<1x32x128xf32>
      %44 = vector.shape_cast %43 : vector<1x32x128xf32> to vector<32x128xf32>
      %45 = vector.shape_cast %42 : vector<32x128xf32> to vector<1x32x128xf32>
      tpu.vector_store %arg5[%c0_26, %c0_27, %c0_28], %45 {strides = array<i32>} : memref<1x32x128xf32, #tpu.memory_space<vmem>>, vector<1x32x128xf32>,
    } else {
    }
    return
  }
  func.func @transform_0(%arg0: i32, %arg1: i32) -> (i32, i32, i32) {
    %c0_i32 = arith.constant 0 : i32
    %c0_i32_0 = arith.constant 0 : i32
    return %arg0, %c0_i32, %arg1 : i32, i32, i32
  }
  func.func @transform_1(%arg0: i32, %arg1: i32) -> (i32, i32) {
    %c0_i32 = arith.constant 0 : i32
    %c0_i32_0 = arith.constant 0 : i32
    %c0_i32_1 = arith.constant 0 : i32
    return %c0_i32, %c0_i32_0 : i32, i32
  }
  func.func @transform_2(%arg0: i32, %arg1: i32) -> (i32, i32) {
    %c0_i32 = arith.constant 0 : i32
    %c0_i32_0 = arith.constant 0 : i32
    %c0_i32_1 = arith.constant 0 : i32
    return %c0_i32, %c0_i32_0 : i32, i32
  }
  func.func @transform_3(%arg0: i32, %arg1: i32) -> (i32, i32, i32) {
    %c0_i32 = arith.constant 0 : i32
    %c0_i32_0 = arith.constant 0 : i32
    %c0_i32_1 = arith.constant 0 : i32
    return %arg0, %c0_i32, %c0_i32_0 : i32, i32, i32
  }
}

</mosaic_0001>

<bundles_post_ra>
// kernel: tpu_custom_call.1
= control target key start
LH: loop header
LB: loop body
LE: loop exit
PB: predicated region body
PF: predicated region fallthrough
CT: control target
= control target key end

     0   :  { %s1660_s0 = inlined_call_operand.hbm [shape: f32[2,128,256], index: 0, kind: input, shape index: {}]   ;;  %s1661_s1 = inlined_call_operand.hbm [shape: f32[32,128], index: 1, kind: input, shape index: {}]   ;;  %s1662_s2 = inlined_call_operand.hbm [shape: f32[32,128], index: 2, kind: input, shape index: {}]   ;;  %s1663_s3 = inlined_call_operand.hbm [shape: f32[2,32,128], index: 3, kind: output, shape index: {}]  }
   0x1   :  { %1674 = sst [smem:[#allocation17_spill]] %s1661_s1 }
   0x2   :  { %1675 = sst [smem:[#allocation18_spill]] %s1662_s2 }
   0x3   :  { %8 = vsyncpa [#allocation5], 0 }
   0x4   :  { %10 = vsyncpa [#allocation5 + $0x1], 0 }
   0x5   :  { %11 = vsyncpa [#allocation8], 0 }
   0x6   :  { %12 = vsyncpa [#allocation6], 0 }
   0x7   :  { %14 = vsyncpa [#allocation6 + $0x1], 0  ;;  %s1317_s12 = smov 0   ;;  %s1319_s13 = smov 0  }
   0x8   :  { %s1321_s14 = smov 0   ;;  %s1323_s15 = smov 0  }
   0x9   :  { %s1325_s16 = smov 0   ;;  %s1327_s17 = smov 0  }
   0xa   :  { %s1329_s18 = smov 0   ;;  %s1331_s19 = smov 0  }
   0xb   :  { %s1333_s20 = smov 0   ;;  %s1335_s21 = smov 0  }
   0xc   :  { %s1337_s22 = smov 0  }
   0xd LB: > { %1676 = sst [smem:[#allocation14_spill]] %s1244_s12  ;;  %s726_s23 = sadd.s32 4294967295, %s1284_s22   ;;  %s1284_s22 = sphi %s1337_s22, %s20_s22   ;;  %s1280_s21 = sphi %s1335_s21, %s1710_s21   ;;  %s1276_s20 = sphi %s1333_s20, %s1709_s20   ;;  %s1272_s19 = sphi %s1331_s19, %s1708_s19   ;;  %s1268_s18 = sphi %s1329_s18, %s1707_s18   ;;  %s1264_s17 = sphi %s1327_s17, %s1706_s17   ;;  %s1260_s16 = sphi %s1325_s16, %s1705_s16   ;;  %s1256_s15 = sphi %s1323_s15, %s1704_s15   ;;  %s1252_s14 = sphi %s1321_s14, %s1703_s14   ;;  %s1248_s13 = sphi %s1319_s13, %s1702_s13   ;;  %s1244_s12 = sphi %s1317_s12, %s1701_s12  }
   0xe   : > { %1677 = sst [smem:[#allocation15_spill]] %s1284_s22  ;;  %s727_s24 = sadd.s32 4294967294, %s1284_s22  }
   0xf   : > { %p48_p0 = scmp.ne.s32.totalorder %s1264_s17, %s1260_s16  ;;  %p49_p1 = scmp.eq.s32.totalorder %s1284_s22, 0 }
  0x10   : > { %p54_p2 = scmp.ne.s32.totalorder %s1260_s16, %s1256_s15  ;;  %p1377_p3 = scmp.eq.s32.totalorder %s726_s23, 0 }
  0x11   : > { %p1382_p4 = por %p49_p1, %p48_p0  ;;  %p119_p5 = scmp.ne.s32.totalorder %s1252_s14, %s1248_s13 }
  0x12   : > { %s1678_s26 = scalar_select %p1377_p3, 1, 0 }
  0x13   : > { %p1390_p6 = por %p1377_p3, %p54_p2  ;;  %p120_p7 = scmp.eq.s32.totalorder %s726_s23, 3 }
  0x14   : > { %p125_p8 = scmp.ne.s32.totalorder %s1248_s13, %s1244_s12  ;;  %p126_p9 = scmp.eq.s32.totalorder %s727_s24, 3 }
  0x15   : > { %s1680_s29 = scalar_select %p1390_p6, 1, 0 }
  0x16   : > { %p1396_p10 = por %p120_p7, %p119_p5  ;;  %p728_p11 = scmp.ge.s32.totalorder %s1284_s22, 1 }
  0x17   : > { %p1401_p12 = por %p126_p9, %p125_p8  ;;  %p133_p13 = scmp.lt.s32.totalorder %s1284_s22, 5 }
  0x18   : > { %s1681_s30 = scalar_select %p1396_p10, 1, 0 }
  0x19   : > { %s1682_s4 = scalar_select %p1401_p12, 1, 0 }
  0x1a   : > { %p1406_p0 = pnand %p728_p11, %p133_p13  ;;  %s1286_s6 = smov [#allocation7]  }
  0x1b   : > { %1683 = sst [smem:[#allocation16_spill]] %s1682_s4  ;;  %s145_s7 = sshll.u32 %s1286_s6, 4  ;;  %s1410_s7 = int_to_ptr.vmem [resolvable:$true] %s145_s7 }
  0x1c   : > { %p940_p1 = pneg %p1406_p0  ;;  %p957_p2 = scmp.lt.s32.totalorder %s1284_s22, 4 }
  0x1d   : > { %s1287_s10 = smov [#allocation9]   ;;  %s1687_s1 = sld [smem:[#allocation17_spill]] }
  0x1e   : > { %p1417_p5 = pnand %p940_p1, %p1377_p3  ;;  %p1423_p7 = pnand %p957_p2, %p1382_p4 }
  0x1f   : > { %s158_s11 = sshll.u32 %s1287_s10, 4  ;;  %s1427_s11 = int_to_ptr.vmem [resolvable:$true] %s158_s11 }
  0x20   : > { %p1074_p9 = pneg %p1417_p5 }
  0x23   : > { %s1072_s24 = scalar_lea.hbm %s1687_s1, 512 }
  0x24   : > { %p1073_p8 = scmp.ne.s32.totalorder %s1687_s1, %s1072_s24  ;;  %p1079_p13 = scmp.lt.u32.totalorder %s1072_s24, %s1687_s1 }
  0x26   : > { %p1075_p4 = pnand %p1074_p9, %p1073_p8 }
  0x28   : > { %p1076_p11 = pneg %p1075_p4 }
  0x2a   : > { %p1081_p1 = pnand %p1079_p13, %p1076_p11 }
  0x2c   : > { %1084 = shalt.err (!%p1081_p1)
}
  0x2d   : > { %s1085_s10 = scalar_lea.vmem %s1410_s7, 512  ;;  %p1093_p3 = scmp.lt.s32.totalorder %s1410_s7, %s1410_s7 }
  0x2e   : > { %p1086_p2 = scmp.ne.s32.totalorder %s1410_s7, %s1085_s10  ;;  %p1094_p8 = scmp.lt.s32.totalorder %s1085_s10, %s1085_s10 }
  0x30   : > { %p1088_p12 = pnand %p1086_p2, %p1074_p9  ;;  %p1095_p4 = por %p1094_p8, %p1093_p3 }
  0x32   : > { %p1089_p10 = pneg %p1088_p12 }
  0x34   : > { %p1096_p6 = pnand %p1095_p4, %p1089_p10 }
  0x36   : > { %1099 = shalt.err (!%p1096_p6)
}
  0x37   : > { %s1672_s25 = smov 128   ;;  %s1673_s27 = smov 8  }
  0x38   : > { %943 = dma.hbm_to_vmem [thread:$0]  (!%p1417_p5), %s1687_s1, 512, %s1410_s7, [#allocation8], %s1672_s25, %s1672_s25, %s1673_s27  }
  0x39   : > { %s1688_s2 = sld [smem:[#allocation18_spill]] }
  0x3f   : > { %s1100_s28 = scalar_lea.hbm %s1688_s2, 512 }
  0x40   : > { %p1101_p3 = scmp.ne.s32.totalorder %s1688_s2, %s1100_s28  ;;  %p1107_p12 = scmp.lt.u32.totalorder %s1100_s28, %s1688_s2 }
  0x42   : > { %p1103_p6 = pnand %p1101_p3, %p1074_p9 }
  0x44   : > { %p1104_p10 = pneg %p1103_p6 }
  0x46   : > { %p1109_p11 = pnand %p1107_p12, %p1104_p10 }
  0x48   : > { %1112 = shalt.err (!%p1109_p11)
}
  0x49   : > { %s1113_s7 = scalar_lea.vmem %s1427_s11, 512  ;;  %p1121_p8 = scmp.lt.s32.totalorder %s1427_s11, %s1427_s11 }
  0x4a   : > { %p1114_p13 = scmp.ne.s32.totalorder %s1427_s11, %s1113_s7  ;;  %p1122_p4 = scmp.lt.s32.totalorder %s1113_s7, %s1113_s7 }
  0x4c   : > { %p1116_p1 = pnand %p1114_p13, %p1074_p9  ;;  %p1123_p3 = por %p1122_p4, %p1121_p8 }
  0x4e   : > { %p1117_p2 = pneg %p1116_p1 }
  0x50   : > { %p1124_p6 = pnand %p1123_p3, %p1117_p2 }
  0x52   : > { %1127 = shalt.err (!%p1124_p6)
}
  0x53   : > { %946 = dma.hbm_to_vmem [thread:$0]  (!%p1417_p5), %s1688_s2, 512, %s1427_s11, [#allocation8], %s1672_s25, %s1672_s25, %s1673_s27  }
  0x54   : > { %s29_s4 = sadd.s32 1, %s1276_s20  ;;  %s32_s15 = sadd.s32 1, %s1280_s21 }
  0x55   : > { %p30_p9 = scmp.ge.s32.totalorder %s29_s4, 2  ;;  %s172_s8 = sand.u32 1, %s1264_s17  }
  0x56   : > { %s733_s23 = sshll.u32 %s1280_s21, 5  ;;  %s732_s6 = sshll.u32 %s172_s8, 7 }
  0x57   : > { %s1712_s4 = smov (%p30_p9, %s29_s4), 0  ;;  %s1714_s15 = smov (!%p30_p9, %s32_s15), %s1280_s21 }
  0x58   : > { %s37_s24 = ssub.s32 %s1276_s20, %s1712_s4  ;;  %p34_p10 = scmp.ge.s32.totalorder %s1714_s15, 2 }
  0x59   : > { %s181_s28 = sadd.s32 %s1276_s20, %s733_s23  ;;  %s176_s10 = scalar_lea.vmem [#allocation4], %s732_s6 }
  0x5a   : > { %s1716_s15 = smov (%p34_p10, %s1714_s15), 0  ;;  %s734_s11 = sshll.u32 %s181_s28, 7 }
  0x5b   : > { %s184_s7 = sshll.u32 %s176_s10, 4  ;;  %s36_s12 = ssub.s32 %s1280_s21, %s1716_s15  ;;  %s1506_s7 = int_to_ptr.vmem [resolvable:$true] %s184_s7 }
  0x5c   : > { %s1504_s27 = scalar_lea.hbm %s1660_s0, %s734_s11  ;;  %s38_s1 = sor.u32 %s37_s24, %s36_s12 }
  0x5d   : > { %p107_p5 = scmp.eq.s32.totalorder %s36_s12, 0  ;;  %p39_p12 = scmp.eq.s32.totalorder %s38_s1, 0 }
  0x5e   : > { %s1689_s23 = sadd.s32 1, %s1252_s14  ;;  %s1690_s6 = sadd.s32 1, %s1264_s17 }
  0x5f   : > { %s1511_s2 = scalar_select %p107_p5, %s1252_s14, %s1689_s23  }
  0x60   : > { %s1516_s28 = scalar_select %p39_p12, %s1264_s17, %s1690_s6  }
  0x61   : > { %s1518_s10 = scalar_lea.sflag [#allocation5], %s172_s8  ;;  %s1128_s25 = scalar_lea.hbm %s1504_s27, 2048 }
  0x62   : > { %p1129_p11 = scmp.ne.s32.totalorder %s1504_s27, %s1128_s25  ;;  %p1130_p13 = pneg %p1423_p7 }
  0x63   : > { %s1133_s11 = scalar_lea.hbm %s1660_s0, 8192  ;;  %p1134_p8 = scmp.lt.u32.totalorder %s1504_s27, %s1660_s0 }
  0x64   : > { %p1131_p1 = pnand %p1130_p13, %p1129_p11  ;;  %p1135_p4 = scmp.lt.u32.totalorder %s1133_s11, %s1128_s25 }
  0x65   : > { %p1137_p6 = scmp.lt.u32.totalorder %s1128_s25, %s1504_s27 }
  0x66   : > { %p1132_p2 = pneg %p1131_p1  ;;  %p1136_p3 = por %p1135_p4, %p1134_p8 }
  0x68   : > { %p1138_p9 = por %p1137_p6, %p1136_p3 }
  0x6a   : > { %p1139_p10 = pnand %p1138_p9, %p1132_p2 }
  0x6c   : > { %1142 = shalt.err (!%p1139_p10)
}
  0x6d   : > { %s1143_s8 = scalar_lea.vmem %s1506_s7, 2048  ;;  %s1290_s23 = smov [#allocation4]  }
  0x6e   : > { %p1144_p5 = scmp.ne.s32.totalorder %s1506_s7, %s1143_s8  ;;  %s1148_s6 = sshll.u32 %s1290_s23, 4  ;;  %s1149_s6 = int_to_ptr.vmem [resolvable:$false] %s1148_s6 }
  0x6f   : > { %s1150_s24 = scalar_lea.vmem %s1149_s6, 4096  ;;  %p1151_p1 = scmp.lt.s32.totalorder %s1506_s7, %s1149_s6 }
  0x70   : > { %p1146_p12 = pnand %p1144_p5, %p1130_p13  ;;  %p1152_p8 = scmp.lt.s32.totalorder %s1150_s24, %s1143_s8 }
  0x72   : > { %p1147_p11 = pneg %p1146_p12  ;;  %p1153_p4 = por %p1152_p8, %p1151_p1 }
  0x74   : > { %p1154_p3 = pnand %p1153_p4, %p1147_p11 }
  0x76   : > { %1157 = shalt.err (!%p1154_p3)
}
  0x77   : > { %s1291_s25 = smov 256   ;;  %s1691_s1 = smov 8  }
  0x78   : > { %s1692_s11 = smov 128   ;;  %196 = sbr.rel (%p1406_p0) target bundleno = 829 (0x33d), region = 32 }
  0x79   : > { %950 = dma.hbm_to_vmem [thread:$0]  (!%p1423_p7), %s1504_s27, 2048, %s1506_s7, %s1518_s10, %s1291_s25, %s1692_s11, %s1691_s1  }
  0x7a   : > { %s198_s12 = sand.u32 (!%p1406_p0), 1, %s1260_s16   ;;  %p1693_p13 = scmp.ne.s32.totalorder (!%p1406_p0), %s1680_s29, 0 }
  0x7b   : > { %s736_s22 = sshll.u32 (!%p1406_p0), %s198_s12, 7  ;;  %s199_s8 = scalar_lea.sflag (!%p1406_p0), [#allocation5], %s198_s12 }
  0x7c   : > { %s1551_s23 = scalar_lea.vmem (!%p1406_p0), [#allocation4], %s736_s22 }
  0x7f   : > { %1231 = dma.done.wait (%p1693_p13), %s199_s8, 2048  }
  0x80   : > { %1233 = vsyncadd (%p1693_p13), %s199_s8, 4294965248  ;;  %p1694_p2 = scmp.ne.s32.totalorder %s1678_s26, 0 }
  0x82   : > { %1235 = dma.done.wait (%p1694_p2), [#allocation8], 1024  }
  0x83   : > { %1237 = vsyncadd (%p1694_p2), [#allocation8], 4294966272  ;;  %s230_s5 = sand.u32 1, %s1248_s13   ;;  %p740_p0 = scmp.ne.s32.totalorder %s1268_s18, 0 }
  0x84   : > { %s739_s9 = sshll.u32 %s230_s5, 5  ;;  %vm241_vm0 = vcmask (!%p740_p0), 7168   ;;  %v1292_v0 = vmov (!%p740_p0), 0.0  }
  0x85   : > { %s1564_s27 = scalar_lea.vmem [#allocation10], %s739_s9  ;;  %236 = sbr.rel (%p740_p0) target bundleno = 140 (0x8c), region = 48  ;;  %237 = vst [vmem:[#allocation2] sm:$0xff] (!%p740_p0), %v1292_v0  ;;  %238 = vst [vmem:[#allocation2 + $0x8] sm:$0xff] (!%p740_p0), %v1292_v0 }
  0x86   : > { %239 = vst [vmem:[#allocation2 + $0x10] sm:$0xff] (!%p740_p0), %v1292_v0  ;;  %240 = vst [vmem:[#allocation2 + $0x18] sm:$0xff] (!%p740_p0), %v1292_v0 }
  0x87   : > { %242 = vst.msk [vmem:[#allocation3] sm:$0xff] (!%p740_p0), %vm241_vm0, %v1292_v0  ;;  %243 = vst.msk [vmem:[#allocation3 + $0x8] sm:$0xff] (!%p740_p0), %vm241_vm0, %v1292_v0 }
  0x88   : > { %244 = vst.msk [vmem:[#allocation3 + $0x10] sm:$0xff] (!%p740_p0), %vm241_vm0, %v1292_v0  ;;  %245 = vst.msk [vmem:[#allocation3 + $0x18] sm:$0xff] (!%p740_p0), %vm241_vm0, %v1292_v0 }
  0x8c PF: > { %v246_v1 = vld [vmem:[%s1551_s23] sm:$0xff]  ;;  %v247_v2 = vld [vmem:[%s1551_s23 + $0x8] sm:$0xff]  ;;  %v248_v3 = vld [vmem:[%s1551_s23 + $0x10] sm:$0xff]  ;;  %vm554_vm1 = vcmask 7168   ;;  %p741_p7 = scmp.ne.s32.totalorder %s1268_s18, 1 }
  0x8d   : > { %v249_v4 = vld [vmem:[%s1551_s23 + $0x18] sm:$0xff]  ;;  %v262_v5 = vmul.f32 %v246_v1, %v246_v1  ;;  %v263_v6 = vmul.f32 %v247_v2, %v247_v2  ;;  %v264_v7 = vmul.f32 %v248_v3, %v248_v3  ;;  %v250_v8 = vld [vmem:[%s1551_s23 + $0x20] sm:$0xff]  ;;  %v251_v11 = vld [vmem:[%s1551_s23 + $0x28] sm:$0xff] }
  0x8e   : > { %v265_v9 = vmul.f32 %v249_v4, %v249_v4  ;;  %v266_v12 = vmul.f32 %v250_v8, %v250_v8  ;;  %v317_v14 = vld [vmem:[#allocation7] sm:$0xff]  ;;  %v252_v15 = vld [vmem:[%s1551_s23 + $0x30] sm:$0xff]  ;;  %v267_v16 = vmul.f32 %v251_v11, %v251_v11  ;;  %v253_v18 = vld [vmem:[%s1551_s23 + $0x38] sm:$0xff] }
  0x8f   : > { %v278_v10 = vadd.f32 %v263_v6, %v262_v5  ;;  %820 = vmatprep.mubr.f32.mxu0 %v317_v14  ;;  %v268_v19 = vmul.f32 %v252_v15, %v252_v15  ;;  %v254_v21 = vld [vmem:[%s1551_s23 + $0x40] sm:$0xff]  ;;  %v269_v22 = vmul.f32 %v253_v18, %v253_v18  ;;  %v255_v24 = vld [vmem:[%s1551_s23 + $0x48] sm:$0xff]  ;;  %v256_v27 = vld [vmem:[%s1551_s23 + $0x50] sm:$0xff] }
  0x90   : > { %v270_v25 = vmul.f32 %v254_v21, %v254_v21  ;;  %v271_v28 = vmul.f32 %v255_v24, %v255_v24  ;;  %v257_v30 = vld [vmem:[%s1551_s23 + $0x58] sm:$0xff]  ;;  %v272_v31 = vmul.f32 %v256_v27, %v256_v27  ;;  %v258_v33 = vld [vmem:[%s1551_s23 + $0x60] sm:$0xff]  ;;  %v259_v36 = vld [vmem:[%s1551_s23 + $0x68] sm:$0xff] }
  0x91   : > { %v279_v13 = vadd.f32 %v278_v10, %v264_v7  ;;  %v273_v34 = vmul.f32 %v257_v30, %v257_v30  ;;  %v274_v37 = vmul.f32 %v258_v33, %v258_v33  ;;  %v260_v39 = vld [vmem:[%s1551_s23 + $0x70] sm:$0xff]  ;;  %v275_v40 = vmul.f32 %v259_v36, %v259_v36  ;;  %v261_v42 = vld [vmem:[%s1551_s23 + $0x78] sm:$0xff] }
  0x92   : > { %v276_v43 = vmul.f32 %v260_v39, %v260_v39  ;;  %v277_v45 = vmul.f32 %v261_v42, %v261_v42 }
  0x93   : > { %v280_v17 = vadd.f32 %v279_v13, %v265_v9 }
  0x95   : > { %v281_v20 = vadd.f32 %v280_v17, %v266_v12  ;;  %v318_v17 = vld [vmem:[#allocation7 + $0x8] sm:$0xff] }
  0x97   : > { %v282_v23 = vadd.f32 %v281_v20, %v267_v16 }
  0x99   : > { %v283_v26 = vadd.f32 %v282_v23, %v268_v19  ;;  %v320_v19 = vld [vmem:[#allocation7 + $0x18] sm:$0xff] }
  0x9b   : > { %v284_v29 = vadd.f32 %v283_v26, %v269_v22 }
  0x9d   : > { %v285_v32 = vadd.f32 %v284_v29, %v270_v25 }
  0x9f   : > { %v286_v35 = vadd.f32 %v285_v32, %v271_v28 }
  0xa1   : > { %v287_v38 = vadd.f32 %v286_v35, %v272_v31 }
  0xa3   : > { %v288_v41 = vadd.f32 %v287_v38, %v273_v34 }
  0xa5   : > { %v289_v44 = vadd.f32 %v288_v41, %v274_v37 }
  0xa7   : > { %v290_v46 = vadd.f32 %v289_v44, %v275_v40 }
  0xa9   : > { %v291_v47 = vadd.f32 %v290_v46, %v276_v43 }
  0xab   : > { %v292_v48 = vadd.f32 %v291_v47, %v277_v45 }
  0xad   : > { %v293_v49 = vrot.slane %v292_v48, 4 }
  0xaf   : > { %v294_v50 = vadd.f32 %v293_v49, %v292_v48 }
  0xb1   : > { %v295_v51 = vrot.slane %v294_v50, 2 }
  0xb3   : > { %v296_v52 = vadd.f32 %v295_v51, %v294_v50 }
  0xb5   : > { %v297_v53 = vrot.slane %v296_v52, 1 }
  0xb7   : > { %v298_v54 = vadd.f32 %v297_v53, %v296_v52 }
  0xb9   : > { %v299_v55 = vmax.f32 %v298_v54, 1e-24 }
  0xbb   : > { %1058 = vrsqrt.f32 %v299_v55 }
  0xc5   : > { %v1059_v56 = vpop.eup %1058 }
  0xc6   : > { %v301_v57 = vmul.f32 %v1059_v56, %v246_v1  ;;  %v302_v58 = vmul.f32 %v1059_v56, %v247_v2  ;;  %v303_v59 = vmul.f32 %v1059_v56, %v248_v3  ;;  %v304_v60 = vmul.f32 %v1059_v56, %v249_v4 }
  0xc7   : > { %v305_v63 = vmul.f32 %v1059_v56, %v250_v8  ;;  %v306_v0 = vmul.f32 %v1059_v56, %v251_v11  ;;  %v307_v6 = vmul.f32 %v1059_v56, %v252_v15  ;;  %v308_v7 = vmul.f32 %v1059_v56, %v253_v18  ;;  %v319_v18 = vld [vmem:[#allocation7 + $0x10] sm:$0xff] }
  0xc8   : > { %v864_v61 = vpack.c.bf16 %v302_v58, %v301_v57  ;;  %v868_v62 = vpack.c.bf16 %v304_v60, %v303_v59  ;;  %v309_v1 = vmul.f32 %v1059_v56, %v254_v21  ;;  %v310_v2 = vmul.f32 %v1059_v56, %v255_v24  ;;  %v540_v59 = vld [vmem:[#allocation3 + $0x10] sm:$0xff]  ;;  %v538_v60 = vld [vmem:[#allocation3] sm:$0xff] }
  0xc9   : > { %v872_v5 = vpack.c.bf16 %v306_v0, %v305_v63  ;;  %v876_v9 = vpack.c.bf16 %v308_v7, %v307_v6  ;;  %v311_v4 = vmul.f32 %v1059_v56, %v256_v27  ;;  %v312_v8 = vmul.f32 %v1059_v56, %v257_v30  ;;  %v539_v6 = vld [vmem:[#allocation3 + $0x8] sm:$0xff] }
  0xca   : > { %865 = vmatprep.subr.bf16.mxu0 %v864_v61  ;;  %897 = vmatprep.subr.bf16.mxu1 %v864_v61  ;;  %v880_v3 = vpack.c.bf16 %v310_v2, %v309_v1  ;;  %v313_v11 = vmul.f32 %v1059_v56, %v258_v33  ;;  %v314_v12 = vmul.f32 %v1059_v56, %v259_v36 }
  0xcb   : > { %867 = vmatpush3.bf16.msra.mxu0 %v864_v61  ;;  %899 = vmatpush3.bf16.xpose.msra.mxu1 %v864_v61  ;;  %v884_v10 = vpack.c.bf16 %v312_v8, %v311_v4  ;;  %v315_v14 = vmul.f32 %v1059_v56, %v260_v39  ;;  %v316_v15 = vmul.f32 %v1059_v56, %v261_v42  ;;  %v441_v4 = vld [vmem:[#allocation2] sm:$0xff] }
  0xcc   : > { %869 = vmatprep.subr.bf16.mxu0 %v868_v62  ;;  %901 = vmatprep.subr.bf16.mxu1 %v868_v62  ;;  %v888_v13 = vpack.c.bf16 %v314_v12, %v313_v11 }
  0xcd   : > { %v892_v16 = vpack.c.bf16 %v316_v15, %v315_v14  ;;  %v443_v14 = vld [vmem:[#allocation2 + $0x10] sm:$0xff] }
  0xcf   : > { %871 = vmatpush3.bf16.msra.mxu0 %v868_v62 }
  0xd0   : > { %873 = vmatprep.subr.bf16.mxu0 %v872_v5 }
  0xd3   : > { %875 = vmatpush3.bf16.msra.mxu0 %v872_v5  ;;  %903 = vmatpush3.bf16.xpose.msra.mxu1 %v868_v62 }
  0xd4   : > { %877 = vmatprep.subr.bf16.mxu0 %v876_v9  ;;  %905 = vmatprep.subr.bf16.mxu1 %v872_v5 }
  0xd7   : > { %879 = vmatpush3.bf16.msra.mxu0 %v876_v9 }
  0xd8   : > { %881 = vmatprep.subr.bf16.mxu0 %v880_v3 }
  0xdb   : > { %883 = vmatpush3.bf16.msra.mxu0 %v880_v3  ;;  %907 = vmatpush3.bf16.xpose.msra.mxu1 %v872_v5  ;;  %v541_v5 = vld [vmem:[#allocation3 + $0x18] sm:$0xff] }
  0xdc   : > { %885 = vmatprep.subr.bf16.mxu0 %v884_v10  ;;  %909 = vmatprep.subr.bf16.mxu1 %v876_v9 }
  0xdf   : > { %887 = vmatpush3.bf16.msra.mxu0 %v884_v10 }
  0xe0   : > { %889 = vmatprep.subr.bf16.mxu0 %v888_v13 }
  0xe3   : > { %891 = vmatpush3.bf16.msra.mxu0 %v888_v13  ;;  %911 = vmatpush3.bf16.xpose.msra.mxu1 %v876_v9 }
  0xe4   : > { %893 = vmatprep.subr.bf16.mxu0 %v892_v16  ;;  %913 = vmatprep.subr.bf16.mxu1 %v880_v3 }
  0xe7   : > { %895 = vmatpush3.bf16.msra.mxu0 %v892_v16 }
  0xea   : > { %821 = vmatmul.mubr.f32.vlgmr.msra.gmra.mrb[0].mxu0 %v318_v17 }
  0xeb   : > { %823 = vmatprep.mubr.f32.mxu0 %v319_v18  ;;  %915 = vmatpush3.bf16.xpose.msra.mxu1 %v880_v3  ;;  %v442_v3 = vld [vmem:[#allocation2 + $0x8] sm:$0xff] }
  0xec   : > { %917 = vmatprep.subr.bf16.mxu1 %v884_v10 }
  0xee   : > { %824 = vmatmul.mubr.f32.gmra.mrb[2].mxu0 %v320_v19 }
  0xf3   : > { %919 = vmatpush3.bf16.xpose.msra.mxu1 %v884_v10 }
  0xf4   : > { %921 = vmatprep.subr.bf16.mxu1 %v888_v13 }
  0xfb   : > { %923 = vmatpush3.bf16.xpose.msra.mxu1 %v888_v13  ;;  %v444_v13 = vld [vmem:[#allocation2 + $0x18] sm:$0xff] }
  0xfc   : > { %925 = vmatprep.subr.bf16.mxu1 %v892_v16 }
 0x103   : > { %927 = vmatpush3.bf16.xpose.msra.mxu1 %v892_v16 }
 0x1bd   : > { %v822_v20 = vpop.f32.mrb[0].mxu0 }
 0x1be   : > { %v387_v21 = vpop.f32.mrb[1].mxu0 }
 0x1bf   : > { %v406_v22 = vmax.f32 %v387_v21, %v822_v20 }
 0x1c1   : > { %v825_v23 = vpop.f32.mrb[2].mxu0 }
 0x1c2   : > { %v397_v24 = vpop.f32.mrb[3].mxu0 }
 0x1c3   : > { %v407_v25 = vmax.f32 %v397_v24, %v825_v23 }
 0x1c5   : > { %v408_v26 = vmax.f32 %v406_v22, %v407_v25  ;;  %v567_v25 = vld [vmem:[#allocation9] sm:$0xff] (!%p741_p7) }
 0x1c7   : > { %v409_v27 = vrot.slane %v408_v26, 4 }
 0x1c9   : > { %v410_v28 = vmax.f32 %v408_v26, %v409_v27 }
 0x1cb   : > { %v411_v29 = vrot.slane %v410_v28, 2 }
 0x1cd   : > { %v412_v30 = vmax.f32 %v410_v28, %v411_v29 }
 0x1cf   : > { %v413_v31 = vrot.slane %v412_v30, 1 }
 0x1d1   : > { %v414_v32 = vmax.f32 %v412_v30, %v413_v31 }
 0x1d3   : > { %v415_v33 = vsub.f32 %v387_v21, %v414_v32  ;;  %v416_v34 = vsub.f32 %v822_v20, %v414_v32  ;;  %v417_v35 = vsub.f32 %v397_v24, %v414_v32  ;;  %v418_v36 = vsub.f32 %v825_v23, %v414_v32  ;;  %v569_v24 = vld [vmem:[#allocation9 + $0x10] sm:$0xff] (!%p741_p7)  ;;  %v570_v32 = vld [vmem:[#allocation9 + $0x18] sm:$0xff] (!%p741_p7) }
 0x1d4   : > { %v1293_v21 = vmov (!%p741_p7), 0  }
 0x1d5   : > { %v419_v37 = vmul.f32 1.442695, %v415_v33  ;;  %v421_v38 = vmul.f32 1.442695, %v416_v34  ;;  %v423_v39 = vmul.f32 1.442695, %v417_v35  ;;  %1071 = vset.pattern.permute.xlu1 (!%p741_p7), %v1293_v21  ;;  %1070 = vset.pattern.permute.xlu0 (!%p741_p7), %v1293_v21 }
 0x1d6   : > { %v425_v40 = vmul.f32 1.442695, %v418_v36  ;;  %v568_v33 = vld [vmem:[#allocation9 + $0x8] sm:$0xff] (!%p741_p7) }
 0x1d7   : > { %1060 = vpow2.f32 %v419_v37 }
 0x1d8   : > { %1062 = vpow2.f32 %v421_v38 }
 0x1d9   : > { %1064 = vpow2.f32 %v423_v39 }
 0x1da   : > { %1066 = vpow2.f32 %v425_v40 }
 0x1e1   : > { %v1061_v41 = vpop.eup %1060 }
 0x1e2   : > { %v1063_v42 = vpop.eup %1062 }
 0x1e3   : > { %v427_v43 = vadd.f32 %v1063_v42, %v1061_v41  ;;  %v1065_v44 = vpop.eup %1064 }
 0x1e4   : > { %v1067_v46 = vpop.eup %1066 }
 0x1e5   : > { %v428_v45 = vadd.f32 %v1065_v44, %v427_v43 }
 0x1e7   : > { %v429_v47 = vadd.f32 %v1067_v46, %v428_v45 }
 0x1e9   : > { %v430_v48 = vrot.slane %v429_v47, 4 }
 0x1eb   : > { %v431_v49 = vadd.f32 %v430_v48, %v429_v47 }
 0x1ed   : > { %v432_v50 = vrot.slane %v431_v49, 2 }
 0x1ef   : > { %v433_v51 = vadd.f32 %v432_v50, %v431_v49 }
 0x1f1   : > { %v434_v52 = vrot.slane %v433_v51, 1 }
 0x1f3   : > { %v435_v53 = vadd.f32 %v434_v52, %v433_v51 }
 0x1f5   : > { %1068 = vrcp.f32 %v435_v53 }
 0x1ff   : > { %v1069_v54 = vpop.eup %1068 }
 0x200   : > { %v439_v55 = vmul.f32 %v1069_v54, %v1065_v44  ;;  %v437_v56 = vmul.f32 %v1069_v54, %v1061_v41  ;;  %v438_v57 = vmul.f32 %v1069_v54, %v1063_v42  ;;  %v440_v58 = vmul.f32 %v1069_v54, %v1067_v46 }
 0x202   : > { %546 = vadd.xlane.f32.xlu1 %v439_v55  ;;  %542 = vadd.xlane.f32.xlu0 %v437_v56 }
 0x203   : > { %858 = vmatprep.mubr.f32.mxu1 %v437_v56 }
 0x204   : > { %859 = vmatmul.mubr.f32.vlgmr.msra.gmra.mrb[0].mxu1 %v438_v57 }
 0x205   : > { %861 = vmatprep.mubr.f32.mxu1 %v439_v55 }
 0x206   : > { %548 = vadd.xlane.f32.xlu1 %v440_v58  ;;  %544 = vadd.xlane.f32.xlu0 %v438_v57 }
 0x208   : > { %862 = vmatmul.mubr.f32.gmra.mrb[2].mxu1 %v440_v58 }
 0x28f   : > { %v547_v61 = vpop.xlane.xlu1 %546  ;;  %v543_v62 = vpop.xlane.xlu0 %542 }
 0x290   : > { %v552_v63 = vadd.f32 %v547_v61, %v540_v59  ;;  %v550_v0 = vadd.f32 %v543_v62, %v538_v60 }
 0x292   : > { %557 = vst.msk [vmem:[#allocation3 + $0x10] sm:$0xff] %vm554_vm1, %v552_v63  ;;  %555 = vst.msk [vmem:[#allocation3] sm:$0xff] %vm554_vm1, %v550_v0 }
 0x293   : > { %v549_v7 = vpop.xlane.xlu1 %548  ;;  %v545_v9 = vpop.xlane.xlu0 %544 }
 0x294   : > { %v553_v1 = vadd.f32 %v549_v7, %v541_v5  ;;  %v551_v2 = vadd.f32 %v545_v9, %v539_v6 }
 0x296   : > { %558 = vst.msk [vmem:[#allocation3 + $0x18] sm:$0xff] %vm554_vm1, %v553_v1  ;;  %556 = vst.msk [vmem:[#allocation3 + $0x8] sm:$0xff] %vm554_vm1, %v551_v2 }
 0x299   : > { %v573_v19 = vld [vmem:[#allocation3 + $0x10] sm:$0xff] (!%p741_p7)  ;;  %v571_v20 = vld [vmem:[#allocation3] sm:$0xff] (!%p741_p7) }
 0x29a   : > { %587 = vperm.xlu1 (!%p741_p7), %1071, %v573_v19   ;;  %577 = vperm.xlu0 (!%p741_p7), %1070, %v571_v20  }
 0x29d   : > { %v574_v22 = vld [vmem:[#allocation3 + $0x18] sm:$0xff] (!%p741_p7)  ;;  %v572_v23 = vld [vmem:[#allocation3 + $0x8] sm:$0xff] (!%p741_p7) }
 0x29e   : > { %592 = vperm.xlu1 (!%p741_p7), %1071, %v574_v22   ;;  %582 = vperm.xlu0 (!%p741_p7), %1070, %v572_v23  }
 0x2d7   : > { %v860_v8 = vpop.f32.mrb[0].mxu1 }
 0x2d8   : > { %v531_v10 = vadd.f32 %v860_v8, %v442_v3  ;;  %v511_v11 = vpop.f32.mrb[1].mxu1 }
 0x2d9   : > { %v530_v12 = vadd.f32 %v511_v11, %v441_v4  ;;  %562 = sbr.rel (%p741_p7) target bundleno = 803 (0x323), region = 52 }
 0x2da   : > { %535 = vst [vmem:[#allocation2 + $0x8] sm:$0xff] %v531_v10 }
 0x2db   : > { %534 = vst [vmem:[#allocation2] sm:$0xff] %v530_v12  ;;  %v863_v15 = vpop.f32.mrb[2].mxu1 }
 0x2dc   : > { %v533_v16 = vadd.f32 %v863_v15, %v444_v13  ;;  %v521_v17 = vpop.f32.mrb[3].mxu1 }
 0x2dd   : > { %v532_v18 = vadd.f32 %v521_v17, %v443_v14 }
 0x2de   : > { %537 = vst [vmem:[#allocation2 + $0x18] sm:$0xff] %v533_v16 }
 0x2df   : > { %536 = vst [vmem:[#allocation2 + $0x10] sm:$0xff] %v532_v18 }
 0x2e1   : > { %v564_v39 = vld [vmem:[#allocation2 + $0x8] sm:$0xff] }
 0x2e2   : > { %v563_v29 = vld [vmem:[#allocation2] sm:$0xff] }
 0x2e5   : > { %v566_v37 = vld [vmem:[#allocation2 + $0x18] sm:$0xff] }
 0x2e6   : > { %v565_v27 = vld [vmem:[#allocation2 + $0x10] sm:$0xff] }
 0x319   : > { %v588_v26 = vpop.permute.xlu1 %587  ;;  %v578_v28 = vpop.permute.xlu0 %577 }
 0x31a   : > { %v597_v30 = vmul.f32 %v588_v26, %v569_v24  ;;  %v595_v31 = vmul.f32 %v578_v28, %v567_v25 }
 0x31c   : > { %v601_v34 = vsub.f32 %v565_v27, %v597_v30  ;;  %v599_v35 = vsub.f32 %v563_v29, %v595_v31 }
 0x31d   : > { %v593_v36 = vpop.permute.xlu1 %592  ;;  %v583_v38 = vpop.permute.xlu0 %582 }
 0x31e   : > { %605 = vst [vmem:[%s1564_s27 + $0x10] sm:$0xff] %v601_v34  ;;  %603 = vst [vmem:[%s1564_s27] sm:$0xff] %v599_v35  ;;  %v598_v40 = vmul.f32 %v593_v36, %v570_v32  ;;  %v596_v41 = vmul.f32 %v583_v38, %v568_v33 }
 0x320   : > { %v602_v42 = vsub.f32 %v566_v37, %v598_v40  ;;  %v600_v43 = vsub.f32 %v564_v39, %v596_v41 }
 0x322   : > { %606 = vst [vmem:[%s1564_s27 + $0x18] sm:$0xff] %v602_v42  ;;  %604 = vst [vmem:[%s1564_s27 + $0x8] sm:$0xff] %v600_v43 }
 0x323 PF: > { %s747_s18 = sshll.u32 %s1272_s19, 9  ;;  %s621_s10 = sshll.u32 %s1564_s27, 4  ;;  %s1595_s10 = int_to_ptr.vmem [resolvable:$true] %s621_s10 }
 0x324   : > { %s1592_s7 = scalar_lea.hbm %s1663_s3, %s747_s18  ;;  %s1599_s6 = scalar_lea.sflag [#allocation6], %s230_s5 }
 0x325   : > { %s1158_s24 = scalar_lea.vmem %s1595_s10, 512  ;;  %p1695_p9 = scmp.ne.s32.totalorder %s1681_s30, 0 }
 0x326   : > { %p1159_p6 = scmp.ne.s32.totalorder %s1595_s10, %s1158_s24  ;;  %s1294_s19 = smov [#allocation10]  }
 0x327   : > { %s1162_s25 = sshll.u32 %s1294_s19, 4  ;;  %s1163_s25 = int_to_ptr.vmem [resolvable:$false] %s1162_s25 }
 0x328   : > { %p1160_p10 = pnand %p1159_p6, %p1695_p9  ;;  %s1164_s1 = scalar_lea.vmem %s1163_s25, 1024 }
 0x329   : > { %p1165_p12 = scmp.lt.s32.totalorder %s1595_s10, %s1163_s25  ;;  %p1166_p11 = scmp.lt.s32.totalorder %s1164_s1, %s1158_s24 }
 0x32a   : > { %p1161_p5 = pneg %p1160_p10 }
 0x32b   : > { %p1167_p1 = por %p1166_p11, %p1165_p12 }
 0x32d   : > { %p1168_p8 = pnand %p1167_p1, %p1161_p5 }
 0x32f   : > { %1171 = shalt.err (!%p1168_p8)
}
 0x330   : > { %s1172_s11 = scalar_lea.hbm %s1592_s7, 512  ;;  %s1176_s8 = scalar_lea.hbm %s1663_s3, 1024 }
 0x331   : > { %p1173_p4 = scmp.ne.s32.totalorder %s1592_s7, %s1172_s11  ;;  %p1177_p2 = scmp.lt.u32.totalorder %s1592_s7, %s1663_s3 }
 0x332   : > { %p1178_p0 = scmp.lt.u32.totalorder %s1176_s8, %s1172_s11  ;;  %p1180_p6 = scmp.lt.u32.totalorder %s1172_s11, %s1592_s7 }
 0x333   : > { %p1174_p3 = pnand %p1173_p4, %p1695_p9 }
 0x334   : > { %p1179_p7 = por %p1178_p0, %p1177_p2 }
 0x335   : > { %p1175_p13 = pneg %p1174_p3 }
 0x336   : > { %p1181_p10 = por %p1180_p6, %p1179_p7 }
 0x338   : > { %p1182_p5 = pnand %p1181_p10, %p1175_p13 }
 0x33a   : > { %1185 = shalt.err (!%p1182_p5)
}
 0x33b   : > { %s1295_s9 = smov 128   ;;  %s1296_s27 = smov 8  }
 0x33c   : > { %938 = dma.vmem_to_hbm [thread:$0]  (%p1695_p9), %s1595_s10, 512, %s1592_s7, %s1599_s6, %s1295_s9, %s1295_s9, %s1296_s27  }
 0x33d PF: > { %s1696_s18 = sld [smem:[#allocation15_spill]]  ;;  %s1697_s26 = sld [smem:[#allocation14_spill]] }
 0x33e   : > { %s1698_s29 = sld [smem:[#allocation16_spill]] }
 0x343   : > { %p960_p12 = scmp.ge.s32.totalorder %s1696_s18, 2  ;;  %s636_s24 = sand.u32 1, %s1697_s26  }
 0x344   : > { %p1699_p11 = scmp.ne.s32.totalorder %s1698_s29, 0  ;;  %s637_s19 = scalar_lea.sflag [#allocation6], %s636_s24 }
 0x346   : > { %p952_p1 = pnand %p960_p12, %p1699_p11 }
 0x348   : > { %1239 = dma.done.wait (!%p952_p1), %s637_s19, 512  }
 0x349   : > { %1241 = vsyncadd (!%p952_p1), %s637_s19, 4294966784  ;;  %s20_s22 = sadd.s32 1, %s1696_s18   ;;  %s1700_s30 = smov %s1716_s15 }
 0x34a   : > { %p17_p8 = scmp.ge.s32.totalorder %s20_s22, 6   ;;  %s1701_s12 = smov %s1248_s13 }
 0x34b   : > { %s1702_s13 = smov %s1252_s14  ;;  %s1703_s14 = smov %s1511_s2 }
 0x34c   : > { %s1704_s15 = smov %s1260_s16  ;;  %s1705_s16 = smov %s1264_s17 }
 0x34d   : > { %s1706_s17 = smov %s1516_s28  ;;  %s1707_s18 = smov %s1276_s20 }
 0x34e   : > { %s1708_s19 = smov %s1280_s21  ;;  %s1709_s20 = smov %s1712_s4 }
 0x34f   : > { %s1710_s21 = smov %s1700_s30  ;;  %19 = sbr.rel (!%p17_p8) target bundleno = 13 (0xd), region = 93 }
 0x356   :  { %642 = vsyncpa [#allocation5], 1 }
 0x357   :  { %644 = vsyncpa [#allocation5 + $0x1], 1 }
 0x358   :  { %645 = vsyncpa [#allocation8], 1 }
 0x359   :  { %646 = vsyncpa [#allocation6], 1 }
 0x35a   :  { %648 = vsyncpa [#allocation6 + $0x1], 1 }

</bundles_post_ra>
